<compile_context>
chip_gen: v7x
topology: tpu7x:2x2x1
jax: 0.10.0
libtpu: 0.0.40
codegen_flags: <defaults>
</compile_context>

<pallas_src>
import functools

import jax
import jax.numpy as jnp
from jax.experimental import pallas as pl
from jax.experimental.pallas import tpu as pltpu

BN_EPS = 1e-5


def reduction_fc_kernel(x_ref, wconv_ref, gamma_ref, beta_ref, wfc_ref,
                        reduce_ref, fc_ref, *, inv_b):
    # x_ref:     [B, Cin]        (caller/compute dtype)
    # wconv_ref: [Cin, Cout]     pre-transposed conv weight (NN contraction)
    # gamma_ref: [1, Cout]  f32
    # beta_ref:  [1, Cout]  f32
    # wfc_ref:   [Cout, Nc]      pre-transposed fc weight (NN contraction)
    x = x_ref[...]

    # 1x1 conv (no bias) == x @ w_conv_t, NN matmul on the MXU, f32 accumulate.
    y = jax.lax.dot_general(
        x, wconv_ref[...],
        dimension_numbers=(((1,), (0,)), ((), ())),
        preferred_element_type=jnp.float32)              # [B, Cout] f32

    # BatchNorm2d (training mode), single pass, all in f32:
    #   mean = sum(y)/B, var = max(sum(y*y)/B - mean^2, 0)  (clamp guards
    #   against f32 cancellation when |mean| >> std).
    s1 = jnp.sum(y, axis=0, keepdims=True)               # [1, Cout]
    s2 = jnp.sum(y * y, axis=0, keepdims=True)           # [1, Cout]
    mean = s1 * inv_b
    var = jnp.maximum(s2 * inv_b - mean * mean, 0.0)
    scale = jax.lax.rsqrt(var + BN_EPS) * gamma_ref[...]  # [1, Cout] (EUP rsqrt)
    shift = beta_ref[...] - mean * scale                  # [1, Cout]
    red = y * scale + shift                               # [B, Cout] f32

    # Cast once; reuse for the FC operand when dtypes match (trace-time branch).
    red_out = red.astype(reduce_ref.dtype)
    reduce_ref[...] = red_out
    if reduce_ref.dtype == wfc_ref.dtype:
        fc_in = red_out
    else:
        fc_in = red.astype(wfc_ref.dtype)

    # Linear (no bias): red @ w_fc_t, NN matmul, f32 accumulation.
    fc = jax.lax.dot_general(
        fc_in, wfc_ref[...],
        dimension_numbers=(((1,), (0,)), ((), ())),
        preferred_element_type=jnp.float32)
    fc_ref[...] = fc.astype(fc_ref.dtype)


def prepare_params(w_conv, gamma, beta, w_fc, *, compute_dtype=None):
    """One-time weight preprocessing (hoisted out of the per-call path).

    w_conv: [feat_out, feat_in, 1, 1]; gamma/beta: [feat_out];
    w_fc: [num_classes, feat_out].
    Returns (wc_t [Cin,Cout], gamma2d [1,Cout] f32, beta2d [1,Cout] f32,
             wf_t [Cout,Nc]) with matmul weights in compute_dtype."""
    feat_out, feat_in = w_conv.shape[0], w_conv.shape[1]
    cdt = jnp.dtype(compute_dtype) if compute_dtype is not None else w_conv.dtype
    wc_t = jnp.transpose(w_conv.reshape(feat_out, feat_in)).astype(cdt)  # [Cin, Cout]
    wf_t = jnp.transpose(w_fc).astype(cdt)                               # [Cout, Nc]
    g2d = gamma.reshape(1, feat_out).astype(jnp.float32)
    b2d = beta.reshape(1, feat_out).astype(jnp.float32)
    return wc_t, g2d, b2d, wf_t


def reduction_fc_forward(x_nchw, wc_t, gamma2d, beta2d, wf_t):
    """x_nchw: [B, feat_in, 1, 1]; remaining args come from prepare_params().
    Returns (reduce [B, feat_out], fc [B, num_classes]) in x's dtype."""
    B, feat_in, H, W = x_nchw.shape
    assert H == 1 and W == 1, "ReductionFc forward requires 1x1 spatial input"
    assert wc_t.shape[0] == feat_in
    feat_out = wc_t.shape[1]
    num_classes = wf_t.shape[1]

    cdt = wc_t.dtype
    out_dtype = x_nchw.dtype

    # Only per-call input prep: reshape + (no-op if already cdt) cast.
    x2d = x_nchw.reshape(B, feat_in).astype(cdt)

    itemsize = jnp.dtype(cdt).itemsize
    flops = 2 * B * feat_in * feat_out + 2 * B * feat_out * num_classes \
        + 8 * B * feat_out
    bytes_accessed = (
        (x2d.size + wc_t.size + wf_t.size) * itemsize
        + (gamma2d.size + beta2d.size) * 4
        + B * feat_out * jnp.dtype(out_dtype).itemsize
        + B * num_classes * jnp.dtype(out_dtype).itemsize)

    vmem = pl.BlockSpec(memory_space=pltpu.MemorySpace.VMEM)

    reduce_out, fc_out = pl.pallas_call(
        functools.partial(reduction_fc_kernel, inv_b=1.0 / B),
        out_shape=(jax.ShapeDtypeStruct((B, feat_out), out_dtype),
                   jax.ShapeDtypeStruct((B, num_classes), out_dtype)),
        in_specs=[vmem, vmem, vmem, vmem, vmem],
        out_specs=(vmem, vmem),
        cost_estimate=pl.CostEstimate(flops=flops,
                                      transcendentals=feat_out,
                                      bytes_accessed=bytes_accessed),
    )(x2d, wc_t, gamma2d, beta2d, wf_t)

    return reduce_out, fc_out


def reference_forward(x_nchw, w_conv, gamma, beta, w_fc):
    B, feat_in, _, _ = x_nchw.shape
    feat_out = w_conv.shape[0]
    x2d = x_nchw.reshape(B, feat_in).astype(jnp.float32)
    y = x2d @ w_conv.reshape(feat_out, feat_in).astype(jnp.float32).T
    mean = jnp.mean(y, axis=0, keepdims=True)
    var = jnp.mean((y - mean) ** 2, axis=0, keepdims=True)
    red = (y - mean) / jnp.sqrt(var + BN_EPS) * gamma[None, :].astype(jnp.float32) \
        + beta[None, :].astype(jnp.float32)
    return red, red @ w_fc.astype(jnp.float32).T


if __name__ == "__main__":
    B, feat_in, feat_out, num_classes = 8, 32, 16, 8

    key = jax.random.PRNGKey(0)
    kx, kconv, kbn, kfc = jax.random.split(key, 4)

    # Deterministic parameter init mirroring the PyTorch __init__:
    #   conv weight: kaiming_normal_(mode='fan_in')  -> std = sqrt(2 / feat_in)
    w_conv = (jax.random.normal(kconv, (feat_out, feat_in, 1, 1), jnp.float32)
              * jnp.sqrt(2.0 / feat_in))
    #   bn weight ~ N(1.0, 0.02), bn bias = 0
    gamma = 1.0 + 0.02 * jax.random.normal(kbn, (feat_out,), jnp.float32)
    beta = jnp.zeros((feat_out,), jnp.float32)
    #   fc weight: kaiming_normal_(mode='fan_out') -> std = sqrt(2 / num_classes)
    w_fc = (jax.random.normal(kfc, (num_classes, feat_out), jnp.float32)
            * jnp.sqrt(2.0 / num_classes))

    x = jax.random.normal(kx, (B, feat_in, 1, 1), jnp.float32)

    red_ref, fc_ref = reference_forward(x, w_conv, gamma, beta, w_fc)

    # f32 path: weight prep done once, tight check against pure-JAX reference.
    params_f32 = prepare_params(w_conv, gamma, beta, w_fc)
    jax.block_until_ready(params_f32)
    reduce_out, fc_out = reduction_fc_forward(x, *params_f32)
    jax.block_until_ready((reduce_out, fc_out))
    assert reduce_out.shape == (B, feat_out) and fc_out.shape == (B, num_classes)
    assert jnp.allclose(reduce_out, red_ref, atol=1e-4, rtol=1e-4)
    assert jnp.allclose(fc_out, fc_ref, atol=1e-4, rtol=1e-4)

    # bf16 matmul operands (half the DMA bytes, 2x MXU rate); BN math stays f32.
    params_bf16 = prepare_params(w_conv, gamma, beta, w_fc,
                                 compute_dtype=jnp.bfloat16)
    jax.block_until_ready(params_bf16)
    reduce_bf, fc_bf = reduction_fc_forward(x, *params_bf16)
    jax.block_until_ready((reduce_bf, fc_bf))
    assert jnp.allclose(reduce_bf, red_ref, atol=3e-1, rtol=5e-2)
    assert jnp.allclose(fc_bf, fc_ref, atol=3e-1, rtol=5e-2)

    print("KERNEL_OK")
</pallas_src>

<mosaic_0001>
module attributes {stable_mosaic.version = 11 : i64} {
  func.func @reduction_fc_kernel(%arg0: memref<8x32xf32, #tpu.memory_space<vmem>>, %arg1: memref<32x16xf32, #tpu.memory_space<vmem>>, %arg2: memref<1x16xf32, #tpu.memory_space<vmem>>, %arg3: memref<1x16xf32, #tpu.memory_space<vmem>>, %arg4: memref<16x8xf32, #tpu.memory_space<vmem>>, %arg5: memref<8x16xf32, #tpu.memory_space<vmem>>, %arg6: memref<8x8xf32, #tpu.memory_space<vmem>>) attributes {dimension_semantics = [], scalar_prefetch = 0 : i64, scratch_operands = 0 : i64, tpu.core_type = #tpu.core_type<tc>} {
    %c0 = arith.constant 0 : index
    %c0_0 = arith.constant 0 : index
    %0 = vector.load %arg0[%c0, %c0_0] : memref<8x32xf32, #tpu.memory_space<vmem>>, vector<8x32xf32>
    %c0_1 = arith.constant 0 : index
    %c0_2 = arith.constant 0 : index
    %1 = vector.load %arg1[%c0_1, %c0_2] : memref<32x16xf32, #tpu.memory_space<vmem>>, vector<32x16xf32>
    %cst = arith.constant dense<0.000000e+00> : vector<8x16xf32>
    %2 = tpu.matmul %0, %1, %cst {dimension_numbers = #tpu.dot_dimension_numbers<[1], [0], [0], [1], [0, 0, 1, 1], [], []>} : vector<8x32xf32>, vector<32x16xf32>, vector<8x16xf32> -> vector<8x16xf32>
    %cst_3 = arith.constant dense<0.000000e+00> : vector<16xf32>
    %3 = vector.multi_reduction <add>, %2, %cst_3 [0] : vector<8x16xf32> to vector<16xf32>
    %4 = vector.shape_cast %3 : vector<16xf32> to vector<1x16xf32>
    %5 = arith.mulf %2, %2 : vector<8x16xf32>
    %cst_4 = arith.constant dense<0.000000e+00> : vector<16xf32>
    %6 = vector.multi_reduction <add>, %5, %cst_4 [0] : vector<8x16xf32> to vector<16xf32>
    %7 = vector.shape_cast %6 : vector<16xf32> to vector<1x16xf32>
    %cst_5 = arith.constant 1.250000e-01 : f32
    %8 = vector.broadcast %cst_5 : f32 to vector<1x16xf32>
    %9 = arith.mulf %4, %8 : vector<1x16xf32>
    %cst_6 = arith.constant 1.250000e-01 : f32
    %10 = vector.broadcast %cst_6 : f32 to vector<1x16xf32>
    %11 = arith.mulf %7, %10 : vector<1x16xf32>
    %12 = arith.mulf %9, %9 : vector<1x16xf32>
    %13 = arith.subf %11, %12 : vector<1x16xf32>
    %cst_7 = arith.constant 0.000000e+00 : f32
    %14 = vector.broadcast %cst_7 : f32 to vector<1x16xf32>
    %15 = arith.maximumf %13, %14 : vector<1x16xf32>
    %cst_8 = arith.constant 9.99999974E-6 : f32
    %16 = vector.broadcast %cst_8 : f32 to vector<1x16xf32>
    %17 = arith.addf %15, %16 : vector<1x16xf32>
    %18 = math.rsqrt %17 : vector<1x16xf32>
    %c0_9 = arith.constant 0 : index
    %c0_10 = arith.constant 0 : index
    %19 = vector.load %arg2[%c0_9, %c0_10] : memref<1x16xf32, #tpu.memory_space<vmem>>, vector<1x16xf32>
    %20 = arith.mulf %18, %19 : vector<1x16xf32>
    %c0_11 = arith.constant 0 : index
    %c0_12 = arith.constant 0 : index
    %21 = vector.load %arg3[%c0_11, %c0_12] : memref<1x16xf32, #tpu.memory_space<vmem>>, vector<1x16xf32>
    %22 = arith.mulf %9, %20 : vector<1x16xf32>
    %23 = arith.subf %21, %22 : vector<1x16xf32>
    %24 = vector.broadcast %20 : vector<1x16xf32> to vector<8x16xf32>
    %25 = arith.mulf %2, %24 : vector<8x16xf32>
    %26 = vector.broadcast %23 : vector<1x16xf32> to vector<8x16xf32>
    %27 = arith.addf %25, %26 : vector<8x16xf32>
    %c0_13 = arith.constant 0 : index
    %c0_14 = arith.constant 0 : index
    %28 = vector.load %arg5[%c0_13, %c0_14] : memref<8x16xf32, #tpu.memory_space<vmem>>, vector<8x16xf32>
    tpu.vector_store %arg5[%c0_13, %c0_14], %27 {strides = array<i32>} : memref<8x16xf32, #tpu.memory_space<vmem>>, vector<8x16xf32>,
    %c0_15 = arith.constant 0 : index
    %c0_16 = arith.constant 0 : index
    %29 = vector.load %arg4[%c0_15, %c0_16] : memref<16x8xf32, #tpu.memory_space<vmem>>, vector<16x8xf32>
    %cst_17 = arith.constant dense<0.000000e+00> : vector<8x8xf32>
    %30 = tpu.matmul %27, %29, %cst_17 {dimension_numbers = #tpu.dot_dimension_numbers<[1], [0], [0], [1], [0, 0, 1, 1], [], []>} : vector<8x16xf32>, vector<16x8xf32>, vector<8x8xf32> -> vector<8x8xf32>
    %c0_18 = arith.constant 0 : index
    %c0_19 = arith.constant 0 : index
    %31 = vector.load %arg6[%c0_18, %c0_19] : memref<8x8xf32, #tpu.memory_space<vmem>>, vector<8x8xf32>
    tpu.vector_store %arg6[%c0_18, %c0_19], %30 {strides = array<i32>} : memref<8x8xf32, #tpu.memory_space<vmem>>, vector<8x8xf32>,
    return
  }
}

</mosaic_0001>

<bundles_post_ra>
// kernel: tpu_custom_call.1
= control target key start
LH: loop header
LB: loop body
LE: loop exit
PB: predicated region body
PF: predicated region fallthrough
CT: control target
= control target key end

     0   :  { %12 = vsyncpa [#allocation3], 0  ;;  %v341_v3 = vmov 0.0|0.0   ;;  %vm342_vm0 = vmmov 0   ;;  %v343_v6 = vmov 0.0   ;;  %s436_s0 = inlined_call_operand.vmem [shape: f32[8,32], index: 0, kind: input, shape index: {}]   ;;  %s437_s1 = inlined_call_operand.vmem [shape: f32[32,16], index: 1, kind: input, shape index: {}]   ;;  %s438_s2 = inlined_call_operand.vmem [shape: f32[1,16], index: 2, kind: input, shape index: {}]   ;;  %s439_s3 = inlined_call_operand.vmem [shape: f32[1,16], index: 3, kind: input, shape index: {}]   ;;  %s440_s4 = inlined_call_operand.vmem [shape: f32[16,8], index: 4, kind: input, shape index: {}]   ;;  %s441_s5 = inlined_call_operand.hbm [shape: f32[8,16], index: 5, kind: output, shape index: {0}]   ;;  %s442_s6 = inlined_call_operand.hbm [shape: f32[8,8], index: 6, kind: output, shape index: {1}]  }
   0x1   :  { %v25_v0 = vld [vmem:[%s437_s1] sm:$0xff]  ;;  %v26_v1 = vld [vmem:[%s437_s1 + $0x8] sm:$0xff]  ;;  %v27_v2 = vld [vmem:[%s437_s1 + $0x10] sm:$0xff]  ;;  %277 = vmatprep.subr.bf16.mxu0 %v341_v3  ;;  %267 = vmatprep.mubr.msk.f32.mxu0 %vm342_vm0, %v343_v6 }
   0x2   :  { %v278_v4 = vpack.c.bf16 %v26_v1, %v25_v0  ;;  %v28_v5 = vld [vmem:[%s437_s1 + $0x18] sm:$0xff] }
   0x3   :  { %13 = vsyncpa [#allocation5], 0  ;;  %283 = vmatprep.subr.bf16.mxu1 %v341_v3  ;;  %274 = vmatprep.mubr.msk.f32.mxu1 %vm342_vm0, %v343_v6  ;;  %v281_v7 = vpack.c.bf16 %v28_v5, %v27_v2  ;;  %v24_v8 = vld [vmem:[%s436_s0] sm:$0xff]  ;;  %vm29_vm1 = vcmask 261120   ;;  %v145_v10 = vld [vmem:[%s440_s4 + $0x8] sm:$0xff]  ;;  %vm103_vm2 = vcmask 130048   ;;  %v131_v35 = vlaneseq }
   0x4   :  { %279 = vmatpush3.bf16.msra.mxu0 %v278_v4  ;;  %v144_v9 = vld [vmem:[%s440_s4] sm:$0xff]  ;;  %s344_s12 = smov [#allocation2]  }
   0x5   :  { %280 = vmatprep.subr.bf16.mxu0 %v341_v3  ;;  %v284_v11 = vpack.c.bf16 %v145_v10, %v144_v9  ;;  %v132_v36 = vshrl.u32 %v131_v35, 7  ;;  %v126_v37 = vld [vmem:[%s438_s2] sm:$0x1]  ;;  %s227_s13 = sshll.u32 %s344_s12, 4  ;;  %s228_s13 = int_to_ptr.vmem [resolvable:$true] %s227_s13 }
   0x6   :  { %v128_v41 = vld [vmem:[%s439_s3] sm:$0x1]  ;;  %s293_s2 = scalar_lea.vmem %s228_s13, 128  ;;  %p298_p1 = scmp.lt.s32.totalorder %s228_s13, %s228_s13 }
   0x7   :  { %285 = vmatpush3.bf16.msra.mxu1 %v284_v11  ;;  %v133_v38 = vsub.s32 0, %v132_v36  ;;  %p294_p0 = scmp.ne.s32.totalorder %s228_s13, %s293_s2  ;;  %p299_p2 = scmp.lt.s32.totalorder %s293_s2, %s293_s2 }
   0x8   :  { %282 = vmatpush3.bf16.msra.mxu0 %v281_v7 }
   0x9   :  { %p300_p3 = por %p299_p2, %p298_p1 }
   0xb   :  { %268 = vmatmul.mubr.msk.f32.vlgmr.msra.gmra.mrb[0].mxu0 %vm29_vm1, %v24_v8  ;;  %p301_p4 = pnand %p300_p3, %p294_p0 }
  0xde   :  { %v99_v12 = vpop.f32.mrb[0].mxu0 }
  0xdf   :  { %v104_v13 = vsel %vm103_vm2, %v99_v12, 0.0  ;;  %v111_v14 = vmul.f32 %v99_v12, %v99_v12  ;;  %v269_v15 = vpop.f32.mrb[1].mxu0 }
  0xe0   :  { %v105_v16 = vrot.slane %v104_v13, 4 }
  0xe1   :  { %v112_v17 = vsel %vm103_vm2, %v111_v14, 0.0 }
  0xe2   :  { %v106_v18 = vadd.f32 %v105_v16, %v104_v13  ;;  %v113_v19 = vrot.slane %v112_v17, 4 }
  0xe4   :  { %v107_v20 = vrot.slane %v106_v18, 2  ;;  %v114_v21 = vadd.f32 %v113_v19, %v112_v17 }
  0xe6   :  { %v108_v22 = vadd.f32 %v107_v20, %v106_v18  ;;  %v115_v23 = vrot.slane %v114_v21, 2 }
  0xe8   :  { %v109_v24 = vrot.slane %v108_v22, 1  ;;  %v116_v25 = vadd.f32 %v115_v23, %v114_v21 }
  0xea   :  { %v110_v26 = vadd.f32 %v109_v24, %v108_v22  ;;  %v117_v27 = vrot.slane %v116_v25, 1 }
  0xec   :  { %v118_v28 = vadd.f32 %v117_v27, %v116_v25  ;;  %v119_v29 = vmul.f32 0.125, %v110_v26 }
  0xee   :  { %v120_v30 = vmul.f32 0.125, %v118_v28  ;;  %v121_v31 = vmul.f32 %v119_v29, %v119_v29 }
  0xf0   :  { %v122_v32 = vsub.f32 %v120_v30, %v121_v31 }
  0xf2   :  { %v123_v33 = vmax.f32 %v122_v32, 0.0 }
  0xf4   :  { %v124_v34 = vadd.f32 1e-05, %v123_v33 }
  0xf6   :  { %291 = vrsqrt.f32 %v124_v34 }
 0x100   :  { %v292_v39 = vpop.eup %291 }
 0x101   :  { %v127_v40 = vmul.f32 %v292_v39, %v126_v37 }
 0x103   :  { %v129_v42 = vmul.f32 %v127_v40, %v119_v29  ;;  %v134_v43 = vrot.slane %v127_v40, %v133_v38 }
 0x105   :  { %v130_v44 = vsub.f32 %v128_v41, %v129_v42  ;;  %v135_v45 = vmul.f32 %v134_v43, %v99_v12 }
 0x107   :  { %v140_v46 = vrot.slane %v130_v44, %v133_v38 }
 0x109   :  { %v142_v47 = vadd.f32 %v140_v46, %v135_v45 }
 0x10b   :  { %143 = vst.msk [vmem:[#allocation2] sm:$0xff] %vm103_vm2, %v142_v47  ;;  %275 = vmatmul.mubr.msk.f32.vlgmr.msra.gmra.mrb[0].mxu1 %vm103_vm2, %v142_v47 }
 0x10c   :  { %304 = shalt.err (!%p301_p4)
}
 0x10d   :  { %s305_s15 = scalar_lea.hbm %s441_s5, 128 }
 0x10e   :  { %p306_p5 = scmp.ne.s32.totalorder %s441_s5, %s305_s15  ;;  %p309_p6 = scmp.lt.u32.totalorder %s305_s15, %s441_s5 }
 0x110   :  { %p311_p7 = pnand %p309_p6, %p306_p5 }
 0x112   :  { %314 = shalt.err (!%p311_p7)
}
 0x113   :  { %230 = dma.vmem_to_hbm [thread:$0]  %s228_s13, 128, %s441_s5, [#allocation3]   ;;  %vm219_vm3 = vcmask 64512  }
 0x114   :  { %s345_s22 = smov [#allocation4]  }
 0x115   :  { %s237_s23 = sshll.u32 %s345_s22, 4  ;;  %s238_s23 = int_to_ptr.vmem [resolvable:$true] %s237_s23 }
 0x116   :  { %s315_s24 = scalar_lea.vmem %s238_s23, 128  ;;  %p320_p9 = scmp.lt.s32.totalorder %s238_s23, %s238_s23 }
 0x117   :  { %p316_p8 = scmp.ne.s32.totalorder %s238_s23, %s315_s24  ;;  %p321_p10 = scmp.lt.s32.totalorder %s315_s24, %s315_s24 }
 0x119   :  { %p322_p11 = por %p321_p10, %p320_p9 }
 0x11b   :  { %p323_p12 = pnand %p322_p11, %p316_p8 }
 0x1de   :  { %v215_v48 = vpop.f32.mrb[0].mxu1 }
 0x1df   :  { %220 = vst.msk [vmem:[#allocation4] sm:$0xff] %vm219_vm3, %v215_v48  ;;  %v276_v49 = vpop.f32.mrb[1].mxu1 }
 0x1e0   :  { %326 = shalt.err (!%p323_p12)
}
 0x1e1   :  { %s327_s27 = scalar_lea.hbm %s442_s6, 128 }
 0x1e2   :  { %p328_p13 = scmp.ne.s32.totalorder %s442_s6, %s327_s27  ;;  %p331_p0 = scmp.lt.u32.totalorder %s327_s27, %s442_s6 }
 0x1e4   :  { %p333_p1 = pnand %p331_p0, %p328_p13 }
 0x1e6   :  { %336 = shalt.err (!%p333_p1)
}
 0x1e7   :  { %240 = dma.vmem_to_hbm [thread:$0]  %s238_s23, 128, %s442_s6, [#allocation5]  }
 0x1e8   :  { %337 = dma.done.wait [#allocation3], 128  }
 0x1e9   :  { %338 = vsyncadd [#allocation3], 4294967168 }
 0x1ea   :  { %339 = dma.done.wait [#allocation5], 128  }
 0x1eb   :  { %340 = vsyncadd [#allocation5], 4294967168 }
 0x1ec   :  { %247 = vsyncpa [#allocation3], 1 }
 0x1ed   :  { %248 = vsyncpa [#allocation5], 1 }

</bundles_post_ra>
